<compile_context>
chip_gen: v5e
topology: v5e:2x2
jax: 0.10.0
libtpu: 0.0.40
codegen_flags: <defaults>
</compile_context>

<pallas_src>
import functools

import jax
import jax.numpy as jnp
from jax.experimental import pallas as pl
from jax.experimental.pallas import tpu as pltpu

LATENT_PAD = 128  # mu / logsigma each padded to one full lane register in the fused matmul


def _round_up(x, m):
    return (x + m - 1) // m * m


def _vae_encoder_kernel(x_ref, w1_ref, b1_ref, w23_ref, b23_ref, eps_ref,
                        z_ref, kl_ref, *, batch, latent):
    # hidden = relu(x @ W1 + b1); x streamed in its native dtype, f32 accumulate.
    h = jnp.dot(x_ref[...], w1_ref[...],
                preferred_element_type=jnp.float32) + b1_ref[...]
    h = jnp.maximum(h, 0.0)                                         # (TB, hidden)

    # Fused projection: [mu | logsigma] = h @ [W2p | W3p] + [b2p | b3p]
    proj = jnp.dot(h, w23_ref[...], preferred_element_type=jnp.float32) + b23_ref[...]
    mu = proj[:, :LATENT_PAD]                                       # (TB, 128)
    logsigma = proj[:, LATENT_PAD:]                                 # (TB, 128)
    sigma = jnp.exp(logsigma)

    # Reparameterization on the real latent lanes only: z = mu + sigma * eps.
    z_ref[...] = (mu[:, :latent] + sigma[:, :latent] * eps_ref[...]).astype(z_ref.dtype)

    # KL = sum(sigma^2 + mu^2 - log(sigma) - 1/2) over REAL rows/cols only.
    #  * padded latent lanes have mu = logsigma = 0 and would each add +0.5;
    #  * tail rows of a ragged last batch tile contain stale VMEM data.
    # Uses logsigma directly (== log(sigma), numerically stable).
    tb = mu.shape[0]
    row = (jax.lax.broadcasted_iota(jnp.int32, (tb, LATENT_PAD), 0)
           + pl.program_id(0) * tb)
    col = jax.lax.broadcasted_iota(jnp.int32, (tb, LATENT_PAD), 1)
    valid = (row < batch) & (col < latent)
    term = sigma * sigma + mu * mu - logsigma - 0.5
    kl_ref[0, 0] = jnp.sum(jnp.where(valid, term, 0.0))


def variational_encoder_forward(x, params, eps, *, tile_b=None):
    """x: (B, C, H, W), eps: (B, latent) ~ N(0,1). Returns (z: (B, latent), kl: scalar)."""
    w1, b1, w2, b2, w3, b3 = params
    b = x.shape[0]
    in_size, hidden = w1.shape
    latent = w2.shape[1]
    assert latent <= LATENT_PAD, "latent dim must fit in one lane register"

    # Flatten only; keep the native dtype so a bf16/uint8 x stream stays narrow.
    x_flat = x.reshape(b, -1)                                       # flatten(start_dim=1)
    eps = eps.astype(jnp.float32)

    # Batch tiling: target ~8 grid steps (pipelining + both v7x TCs), rows a
    # multiple of 8 (f32 sublane), x tile capped at ~4 MiB.
    if tile_b is None:
        if b <= 8:
            tile_b = b                       # single tile == full batch dim (always legal)
        else:
            tile_b = _round_up(pl.cdiv(b, 8), 8)
            bytes_per_row = in_size * x_flat.dtype.itemsize
            max_rows = max(8, (4 << 20) // max(bytes_per_row, 1) // 8 * 8)
            tile_b = max(8, min(tile_b, 512, max_rows))
    num_tiles = pl.cdiv(b, tile_b)
    out_rows = num_tiles * tile_b            # >= b; ragged tail rows sliced off below

    # Pack W2 / W3 (and biases) into one [hidden, 2*128] lane-dense projection.
    w2p = jnp.pad(w2, ((0, 0), (0, LATENT_PAD - latent)))
    w3p = jnp.pad(w3, ((0, 0), (0, LATENT_PAD - latent)))
    w23 = jnp.concatenate([w2p, w3p], axis=1)                       # (hidden, 256)
    b2p = jnp.pad(b2.reshape(1, -1), ((0, 0), (0, LATENT_PAD - latent)))
    b3p = jnp.pad(b3.reshape(1, -1), ((0, 0), (0, LATENT_PAD - latent)))
    b23 = jnp.concatenate([b2p, b3p], axis=1)                       # (1, 256)
    b1_row = b1.reshape(1, -1)

    # Explicit VMEM budget: double-buffered tiles + resident weights + headroom.
    weight_bytes = (w1.size * w1.dtype.itemsize + w23.size * w23.dtype.itemsize
                    + b1_row.size * b1_row.dtype.itemsize + b23.size * b23.dtype.itemsize)
    tile_bytes = tile_b * (in_size * x_flat.dtype.itemsize + 2 * latent * 4)
    vmem_limit = int(min(2 * (weight_bytes + tile_bytes) + (8 << 20), 48 << 20))

    kernel = functools.partial(_vae_encoder_kernel, batch=b, latent=latent)

    z_out, kl_parts = pl.pallas_call(
        kernel,
        out_shape=(
            jax.ShapeDtypeStruct((out_rows, latent), jnp.float32),
            jax.ShapeDtypeStruct((num_tiles, 1), jnp.float32),
        ),
        grid=(num_tiles,),
        in_specs=[
            pl.BlockSpec((tile_b, in_size), lambda i: (i, 0)),          # x tile (native dtype)
            pl.BlockSpec((in_size, hidden), lambda i: (0, 0)),          # W1 (resident)
            pl.BlockSpec((1, hidden), lambda i: (0, 0)),                # b1
            pl.BlockSpec((hidden, 2 * LATENT_PAD), lambda i: (0, 0)),   # W2|W3 packed
            pl.BlockSpec((1, 2 * LATENT_PAD), lambda i: (0, 0)),        # b2|b3 packed
            pl.BlockSpec((tile_b, latent), lambda i: (i, 0)),           # eps tile (unpadded)
        ],
        out_specs=(
            pl.BlockSpec((tile_b, latent), lambda i: (i, 0)),           # z (unpadded lanes)
            pl.BlockSpec((1, 1), lambda i: (i, 0),
                         memory_space=pltpu.MemorySpace.SMEM),          # per-tile KL partial
        ),
        compiler_params=pltpu.CompilerParams(
            dimension_semantics=("parallel",),
            vmem_limit_bytes=vmem_limit),
    )(x_flat, w1, b1_row, w23, b23, eps)

    z = z_out if out_rows == b else z_out[:b]
    kl = jnp.sum(kl_parts)
    return z, kl


def init_params(key, in_size, hidden_size, latent_dims):
    """Deterministic init mirroring nn.Linear default (uniform +/- 1/sqrt(fan_in))."""
    ks = jax.random.split(key, 6)

    def lin(kw, kb, fan_in, fan_out):
        bound = 1.0 / jnp.sqrt(float(fan_in))
        w = jax.random.uniform(kw, (fan_in, fan_out), jnp.float32, -bound, bound)
        b = jax.random.uniform(kb, (1, fan_out), jnp.float32, -bound, bound)
        return w, b

    w1, b1 = lin(ks[0], ks[1], in_size, hidden_size)
    w2, b2 = lin(ks[2], ks[3], hidden_size, latent_dims)
    w3, b3 = lin(ks[4], ks[5], hidden_size, latent_dims)
    return (w1, b1, w2, b2, w3, b3)


def _reference(x, params, eps):
    w1, b1, w2, b2, w3, b3 = params
    xf = x.reshape(x.shape[0], -1).astype(jnp.float32)
    h = jnp.maximum(xf @ w1 + b1, 0.0)
    mu = h @ w2 + b2
    logsig = h @ w3 + b3
    sigma = jnp.exp(logsig)
    z = mu + sigma * eps
    kl = jnp.sum(sigma ** 2 + mu ** 2 - logsig - 0.5)
    return z, kl


if __name__ == "__main__":
    key = jax.random.PRNGKey(0)
    k_x, k_p, k_eps, k_x2, k_eps2 = jax.random.split(key, 5)

    # Small shapes consistent with the module: x is NCHW, flattened per-sample.
    B, C, H, W = 2, 4, 16, 16
    in_size = C * H * W        # 1024
    hidden_size = 32
    latent_dims = 8

    params = init_params(k_p, in_size, hidden_size, latent_dims)

    # TODO(synk): torch.distributions.Normal(0,1).sample() has no in-kernel
    # equivalent here; the standard-normal eps is sampled with jax.random and
    # passed in (reparameterization trick stays identical).  It could be moved
    # in-kernel with pltpu.prng_seed/prng_random_bits + Box-Muller if changing
    # the RNG stream is acceptable.
    x = jax.random.normal(k_x, (B, C, H, W), jnp.float32)
    eps = jax.random.normal(k_eps, (B, latent_dims), jnp.float32)

    z, kl = variational_encoder_forward(x, params, eps)
    jax.block_until_ready((z, kl))

    z_ref, kl_ref = _reference(x, params, eps)
    assert z.shape == (B, latent_dims)
    assert jnp.allclose(z, z_ref, atol=1e-4, rtol=1e-4)
    assert jnp.allclose(kl, kl_ref, atol=1e-3, rtol=1e-4)

    # Multi-tile path: 32 rows -> 4 batch tiles of 8 rows, per-tile KL partials.
    B2 = 32
    x2 = jax.random.normal(k_x2, (B2, C, H, W), jnp.float32)
    eps2 = jax.random.normal(k_eps2, (B2, latent_dims), jnp.float32)
    z2, kl2 = variational_encoder_forward(x2, params, eps2)
    jax.block_until_ready((z2, kl2))

    z2_ref, kl2_ref = _reference(x2, params, eps2)
    assert z2.shape == (B2, latent_dims)
    assert jnp.allclose(z2, z2_ref, atol=1e-4, rtol=1e-4)
    assert jnp.allclose(kl2, kl2_ref, atol=1e-3, rtol=1e-4)

    print("KERNEL_OK")
</pallas_src>

<mosaic_0001>
module attributes {stable_mosaic.version = 11 : i64} {
  func.func @_vae_encoder_kernel(%arg0: i32, %arg1: memref<2x1024xf32, #tpu.memory_space<vmem>>, %arg2: memref<1024x32xf32, #tpu.memory_space<vmem>>, %arg3: memref<1x32xf32, #tpu.memory_space<vmem>>, %arg4: memref<32x256xf32, #tpu.memory_space<vmem>>, %arg5: memref<1x256xf32, #tpu.memory_space<vmem>>, %arg6: memref<2x8xf32, #tpu.memory_space<vmem>>, %arg7: memref<2x8xf32, #tpu.memory_space<vmem>>, %arg8: memref<1x1xf32, #tpu.memory_space<smem>>) attributes {dimension_semantics = [#tpu.dimension_semantics<parallel>], iteration_bounds = array<i64: 1>, scalar_prefetch = 0 : i64, scratch_operands = 0 : i64, tpu.core_type = #tpu.core_type<tc>, window_params = [{transform_indices = @transform_0, window_bounds = array<i64: 2, 1024>}, {pipeline_mode = #tpu.pipeline_mode<synchronous>, transform_indices = @transform_1, window_bounds = array<i64: 1024, 32>}, {pipeline_mode = #tpu.pipeline_mode<synchronous>, transform_indices = @transform_2, window_bounds = array<i64: 1, 32>}, {pipeline_mode = #tpu.pipeline_mode<synchronous>, transform_indices = @transform_3, window_bounds = array<i64: 32, 256>}, {pipeline_mode = #tpu.pipeline_mode<synchronous>, transform_indices = @transform_4, window_bounds = array<i64: 1, 256>}, {transform_indices = @transform_5, window_bounds = array<i64: 2, 8>}, {transform_indices = @transform_6, window_bounds = array<i64: 2, 8>}, {transform_indices = @transform_7, window_bounds = array<i64: 1, 1>}]} {
    %c0 = arith.constant 0 : index
    %c0_0 = arith.constant 0 : index
    %0 = vector.load %arg1[%c0, %c0_0] : memref<2x1024xf32, #tpu.memory_space<vmem>>, vector<2x1024xf32>
    %c0_1 = arith.constant 0 : index
    %c0_2 = arith.constant 0 : index
    %1 = vector.load %arg2[%c0_1, %c0_2] : memref<1024x32xf32, #tpu.memory_space<vmem>>, vector<1024x32xf32>
    %cst = arith.constant dense<0.000000e+00> : vector<2x32xf32>
    %2 = tpu.matmul %0, %1, %cst {dimension_numbers = #tpu.dot_dimension_numbers<[1], [0], [0], [1], [0, 0, 1, 1], [], []>} : vector<2x1024xf32>, vector<1024x32xf32>, vector<2x32xf32> -> vector<2x32xf32>
    %c0_3 = arith.constant 0 : index
    %c0_4 = arith.constant 0 : index
    %3 = vector.load %arg3[%c0_3, %c0_4] : memref<1x32xf32, #tpu.memory_space<vmem>>, vector<1x32xf32>
    %4 = vector.broadcast %3 : vector<1x32xf32> to vector<2x32xf32>
    %5 = arith.addf %2, %4 : vector<2x32xf32>
    %cst_5 = arith.constant 0.000000e+00 : f32
    %6 = vector.broadcast %cst_5 : f32 to vector<2x32xf32>
    %7 = arith.maximumf %5, %6 : vector<2x32xf32>
    %c0_6 = arith.constant 0 : index
    %c0_7 = arith.constant 0 : index
    %8 = vector.load %arg4[%c0_6, %c0_7] : memref<32x256xf32, #tpu.memory_space<vmem>>, vector<32x256xf32>
    %cst_8 = arith.constant dense<0.000000e+00> : vector<2x256xf32>
    %9 = tpu.matmul %7, %8, %cst_8 {dimension_numbers = #tpu.dot_dimension_numbers<[1], [0], [0], [1], [0, 0, 1, 1], [], []>} : vector<2x32xf32>, vector<32x256xf32>, vector<2x256xf32> -> vector<2x256xf32>
    %c0_9 = arith.constant 0 : index
    %c0_10 = arith.constant 0 : index
    %10 = vector.load %arg5[%c0_9, %c0_10] : memref<1x256xf32, #tpu.memory_space<vmem>>, vector<1x256xf32>
    %11 = vector.broadcast %10 : vector<1x256xf32> to vector<2x256xf32>
    %12 = arith.addf %9, %11 : vector<2x256xf32>
    %13 = vector.extract_strided_slice %12 {offsets = [0, 0], sizes = [2, 128], strides = [1, 1]} : vector<2x256xf32> to vector<2x128xf32>
    %14 = vector.extract_strided_slice %12 {offsets = [0, 128], sizes = [2, 128], strides = [1, 1]} : vector<2x256xf32> to vector<2x128xf32>
    %15 = math.exp %14 : vector<2x128xf32>
    %16 = vector.extract_strided_slice %13 {offsets = [0, 0], sizes = [2, 8], strides = [1, 1]} : vector<2x128xf32> to vector<2x8xf32>
    %17 = vector.extract_strided_slice %15 {offsets = [0, 0], sizes = [2, 8], strides = [1, 1]} : vector<2x128xf32> to vector<2x8xf32>
    %c0_11 = arith.constant 0 : index
    %c0_12 = arith.constant 0 : index
    %18 = vector.load %arg6[%c0_11, %c0_12] : memref<2x8xf32, #tpu.memory_space<vmem>>, vector<2x8xf32>
    %19 = arith.mulf %17, %18 : vector<2x8xf32>
    %20 = arith.addf %16, %19 : vector<2x8xf32>
    %c0_13 = arith.constant 0 : index
    %c0_14 = arith.constant 0 : index
    %21 = vector.load %arg7[%c0_13, %c0_14] : memref<2x8xf32, #tpu.memory_space<vmem>>, vector<2x8xf32>
    tpu.vector_store %arg7[%c0_13, %c0_14], %20 {strides = array<i32>} : memref<2x8xf32, #tpu.memory_space<vmem>>, vector<2x8xf32>,
    %22 = tpu.iota {dimensions = array<i32: 0>} : vector<2x128xi32>
    %c2_i32 = arith.constant 2 : i32
    %23 = arith.muli %arg0, %c2_i32 : i32
    %24 = vector.broadcast %23 : i32 to vector<2x128xi32>
    %25 = arith.addi %22, %24 : vector<2x128xi32>
    %26 = tpu.iota {dimensions = array<i32: 1>} : vector<2x128xi32>
    %c2_i32_15 = arith.constant 2 : i32
    %27 = vector.broadcast %c2_i32_15 : i32 to vector<2x128xi32>
    %28 = arith.cmpi slt, %25, %27 : vector<2x128xi32>
    %c8_i32 = arith.constant 8 : i32
    %29 = vector.broadcast %c8_i32 : i32 to vector<2x128xi32>
    %30 = arith.cmpi slt, %26, %29 : vector<2x128xi32>
    %31 = arith.andi %28, %30 : vector<2x128xi1>
    %32 = arith.mulf %15, %15 : vector<2x128xf32>
    %33 = arith.mulf %13, %13 : vector<2x128xf32>
    %34 = arith.addf %32, %33 : vector<2x128xf32>
    %35 = arith.subf %34, %14 : vector<2x128xf32>
    %cst_16 = arith.constant 5.000000e-01 : f32
    %36 = vector.broadcast %cst_16 : f32 to vector<2x128xf32>
    %37 = arith.subf %35, %36 : vector<2x128xf32>
    %cst_17 = arith.constant 0.000000e+00 : f32
    %38 = vector.broadcast %cst_17 : f32 to vector<2x128xf32>
    %39 = arith.select %31, %37, %38 : vector<2x128xi1>, vector<2x128xf32>
    %40 = vector.shape_cast %39 : vector<2x128xf32> to vector<1x2x128xf32>
    %cst_18 = arith.constant dense<0.000000e+00> : vector<1xf32>
    %41 = vector.multi_reduction <add>, %40, %cst_18 [1, 2] : vector<1x2x128xf32> to vector<1xf32>
    %42 = vector.shape_cast %41 : vector<1xf32> to vector<1x1x1xf32>
    %43 = vector.extract %42[0, 0, 0] : f32 from vector<1x1x1xf32>
    %c0_19 = arith.constant 0 : index
    %c0_20 = arith.constant 0 : index
    %44 = memref.load %arg8[%c0_19, %c0_20] : memref<1x1xf32, #tpu.memory_space<smem>>
    memref.store %43, %arg8[%c0_19, %c0_20] : memref<1x1xf32, #tpu.memory_space<smem>>
    return
  }
  func.func @transform_0(%arg0: i32) -> (i32, i32) {
    %c0_i32 = arith.constant 0 : i32
    %c0_i32_0 = arith.constant 0 : i32
    return %arg0, %c0_i32 : i32, i32
  }
  func.func @transform_1(%arg0: i32) -> (i32, i32) {
    %c0_i32 = arith.constant 0 : i32
    %c0_i32_0 = arith.constant 0 : i32
    %c0_i32_1 = arith.constant 0 : i32
    return %c0_i32, %c0_i32_0 : i32, i32
  }
  func.func @transform_2(%arg0: i32) -> (i32, i32) {
    %c0_i32 = arith.constant 0 : i32
    %c0_i32_0 = arith.constant 0 : i32
    %c0_i32_1 = arith.constant 0 : i32
    return %c0_i32, %c0_i32_0 : i32, i32
  }
  func.func @transform_3(%arg0: i32) -> (i32, i32) {
    %c0_i32 = arith.constant 0 : i32
    %c0_i32_0 = arith.constant 0 : i32
    %c0_i32_1 = arith.constant 0 : i32
    return %c0_i32, %c0_i32_0 : i32, i32
  }
  func.func @transform_4(%arg0: i32) -> (i32, i32) {
    %c0_i32 = arith.constant 0 : i32
    %c0_i32_0 = arith.constant 0 : i32
    %c0_i32_1 = arith.constant 0 : i32
    return %c0_i32, %c0_i32_0 : i32, i32
  }
  func.func @transform_5(%arg0: i32) -> (i32, i32) {
    %c0_i32 = arith.constant 0 : i32
    %c0_i32_0 = arith.constant 0 : i32
    return %arg0, %c0_i32 : i32, i32
  }
  func.func @transform_6(%arg0: i32) -> (i32, i32) {
    %c0_i32 = arith.constant 0 : i32
    %c0_i32_0 = arith.constant 0 : i32
    return %arg0, %c0_i32 : i32, i32
  }
  func.func @transform_7(%arg0: i32) -> (i32, i32) {
    %c0_i32 = arith.constant 0 : i32
    %c0_i32_0 = arith.constant 0 : i32
    return %arg0, %c0_i32 : i32, i32
  }
}

</mosaic_0001>

<bundles_post_ra>
// kernel: tpu_custom_call.1
= control target key start
LH: loop header
LB: loop body
LE: loop exit
PB: predicated region body
PF: predicated region fallthrough
CT: control target
= control target key end

     0   :  { %13 = vsyncpa [#allocation3], 0  ;;  %s989_s0 = inlined_call_operand.vmem [shape: f32[2,1024], index: 0, kind: input, shape index: {}]   ;;  %s990_s1 = inlined_call_operand.vmem [shape: f32[1024,32], index: 1, kind: input, shape index: {}]   ;;  %s991_s2 = inlined_call_operand.vmem [shape: f32[1,32], index: 2, kind: input, shape index: {}]   ;;  %s992_s3 = inlined_call_operand.vmem [shape: f32[32,256], index: 3, kind: input, shape index: {}]   ;;  %s993_s4 = inlined_call_operand.vmem [shape: f32[1,256], index: 4, kind: input, shape index: {}]   ;;  %s994_s5 = inlined_call_operand.vmem [shape: f32[2,8], index: 5, kind: input, shape index: {}]   ;;  %s995_s6 = inlined_call_operand.hbm [shape: f32[2,8], index: 6, kind: output, shape index: {0}]   ;;  %s996_s7 = inlined_call_operand.hbm [shape: f32[1,1], index: 7, kind: output, shape index: {1}]  }
   0x1   :  { %v76_v0 = vld [vmem:[%s990_s1 + $0x178] sm:$0xff]  ;;  %v75_v2 = vld [vmem:[%s990_s1 + $0x170] sm:$0xff]  ;;  %v74_v6 = vld [vmem:[%s990_s1 + $0x168] sm:$0xff] }
   0x2   :  { %v44_v1 = vld [vmem:[%s990_s1 + $0x78] sm:$0xff]  ;;  %222 = vmatpush.msra.mxu2 %v76_v0  ;;  %v43_v4 = vld [vmem:[%s990_s1 + $0x70] sm:$0xff]  ;;  %v42_v8 = vld [vmem:[%s990_s1 + $0x68] sm:$0xff] }
   0x3   :  { %182 = vmatpush.msra.mxu0 %v44_v1  ;;  %v92_v3 = vld [vmem:[%s990_s1 + $0x1f8] sm:$0xff]  ;;  %v91_v7 = vld [vmem:[%s990_s1 + $0x1f0] sm:$0xff]  ;;  %v90_v10 = vld [vmem:[%s990_s1 + $0x1e8] sm:$0xff] }
   0x4   :  { %v60_v5 = vld [vmem:[%s990_s1 + $0xf8] sm:$0xff]  ;;  %242 = vmatpush.msra.mxu3 %v92_v3  ;;  %223 = vmatpush.msra.mxu2 %v75_v2  ;;  %v59_v9 = vld [vmem:[%s990_s1 + $0xf0] sm:$0xff]  ;;  %v73_v11 = vld [vmem:[%s990_s1 + $0x160] sm:$0xff] }
   0x5   :  { %202 = vmatpush.msra.mxu1 %v60_v5  ;;  %183 = vmatpush.msra.mxu0 %v43_v4  ;;  %v41_v12 = vld [vmem:[%s990_s1 + $0x60] sm:$0xff]  ;;  %v58_v13 = vld [vmem:[%s990_s1 + $0xe8] sm:$0xff]  ;;  %v72_v16 = vld [vmem:[%s990_s1 + $0x158] sm:$0xff] }
   0x6   :  { %243 = vmatpush.msra.mxu3 %v91_v7  ;;  %224 = vmatpush.msra.mxu2 %v74_v6  ;;  %v89_v14 = vld [vmem:[%s990_s1 + $0x1e0] sm:$0xff]  ;;  %v40_v17 = vld [vmem:[%s990_s1 + $0x58] sm:$0xff]  ;;  %v71_v20 = vld [vmem:[%s990_s1 + $0x150] sm:$0xff] }
   0x7   :  { %203 = vmatpush.msra.mxu1 %v59_v9  ;;  %184 = vmatpush.msra.mxu0 %v42_v8  ;;  %v57_v15 = vld [vmem:[%s990_s1 + $0xe0] sm:$0xff]  ;;  %v88_v18 = vld [vmem:[%s990_s1 + $0x1d8] sm:$0xff]  ;;  %v39_v21 = vld [vmem:[%s990_s1 + $0x50] sm:$0xff] }
   0x8   :  { %244 = vmatpush.msra.mxu3 %v90_v10  ;;  %225 = vmatpush.msra.mxu2 %v73_v11  ;;  %v56_v19 = vld [vmem:[%s990_s1 + $0xd8] sm:$0xff]  ;;  %v87_v22 = vld [vmem:[%s990_s1 + $0x1d0] sm:$0xff]  ;;  %v70_v24 = vld [vmem:[%s990_s1 + $0x148] sm:$0xff] }
   0x9   :  { %204 = vmatpush.msra.mxu1 %v58_v13  ;;  %185 = vmatpush.msra.mxu0 %v41_v12  ;;  %v55_v23 = vld [vmem:[%s990_s1 + $0xd0] sm:$0xff]  ;;  %v38_v25 = vld [vmem:[%s990_s1 + $0x48] sm:$0xff]  ;;  %v69_v28 = vld [vmem:[%s990_s1 + $0x140] sm:$0xff] }
   0xa   :  { %245 = vmatpush.msra.mxu3 %v89_v14  ;;  %226 = vmatpush.msra.mxu2 %v72_v16  ;;  %v86_v26 = vld [vmem:[%s990_s1 + $0x1c8] sm:$0xff]  ;;  %v37_v29 = vld [vmem:[%s990_s1 + $0x40] sm:$0xff]  ;;  %v68_v32 = vld [vmem:[%s990_s1 + $0x138] sm:$0xff] }
   0xb   :  { %205 = vmatpush.msra.mxu1 %v57_v15  ;;  %186 = vmatpush.msra.mxu0 %v40_v17  ;;  %v54_v27 = vld [vmem:[%s990_s1 + $0xc8] sm:$0xff]  ;;  %v85_v30 = vld [vmem:[%s990_s1 + $0x1c0] sm:$0xff]  ;;  %v36_v33 = vld [vmem:[%s990_s1 + $0x38] sm:$0xff] }
   0xc   :  { %246 = vmatpush.msra.mxu3 %v88_v18  ;;  %227 = vmatpush.msra.mxu2 %v71_v20  ;;  %v53_v31 = vld [vmem:[%s990_s1 + $0xc0] sm:$0xff]  ;;  %v84_v34 = vld [vmem:[%s990_s1 + $0x1b8] sm:$0xff]  ;;  %v67_v36 = vld [vmem:[%s990_s1 + $0x130] sm:$0xff] }
   0xd   :  { %206 = vmatpush.msra.mxu1 %v56_v19  ;;  %187 = vmatpush.msra.mxu0 %v39_v21  ;;  %v52_v35 = vld [vmem:[%s990_s1 + $0xb8] sm:$0xff]  ;;  %v35_v37 = vld [vmem:[%s990_s1 + $0x30] sm:$0xff]  ;;  %v66_v40 = vld [vmem:[%s990_s1 + $0x128] sm:$0xff] }
   0xe   :  { %247 = vmatpush.msra.mxu3 %v87_v22  ;;  %228 = vmatpush.msra.mxu2 %v70_v24  ;;  %v83_v38 = vld [vmem:[%s990_s1 + $0x1b0] sm:$0xff]  ;;  %v34_v41 = vld [vmem:[%s990_s1 + $0x28] sm:$0xff]  ;;  %v65_v44 = vld [vmem:[%s990_s1 + $0x120] sm:$0xff] }
   0xf   :  { %207 = vmatpush.msra.mxu1 %v55_v23  ;;  %188 = vmatpush.msra.mxu0 %v38_v25  ;;  %v51_v39 = vld [vmem:[%s990_s1 + $0xb0] sm:$0xff]  ;;  %v82_v42 = vld [vmem:[%s990_s1 + $0x1a8] sm:$0xff]  ;;  %v33_v45 = vld [vmem:[%s990_s1 + $0x20] sm:$0xff] }
  0x10   :  { %248 = vmatpush.msra.mxu3 %v86_v26  ;;  %229 = vmatpush.msra.mxu2 %v69_v28  ;;  %v50_v43 = vld [vmem:[%s990_s1 + $0xa8] sm:$0xff]  ;;  %v81_v46 = vld [vmem:[%s990_s1 + $0x1a0] sm:$0xff]  ;;  %v64_v48 = vld [vmem:[%s990_s1 + $0x118] sm:$0xff] }
  0x11   :  { %208 = vmatpush.msra.mxu1 %v54_v27  ;;  %189 = vmatpush.msra.mxu0 %v37_v29  ;;  %v49_v47 = vld [vmem:[%s990_s1 + $0xa0] sm:$0xff]  ;;  %v32_v49 = vld [vmem:[%s990_s1 + $0x18] sm:$0xff]  ;;  %v63_v52 = vld [vmem:[%s990_s1 + $0x110] sm:$0xff] }
  0x12   :  { %249 = vmatpush.msra.mxu3 %v85_v30  ;;  %230 = vmatpush.msra.mxu2 %v68_v32  ;;  %v80_v50 = vld [vmem:[%s990_s1 + $0x198] sm:$0xff]  ;;  %v31_v53 = vld [vmem:[%s990_s1 + $0x10] sm:$0xff]  ;;  %v62_v56 = vld [vmem:[%s990_s1 + $0x108] sm:$0xff] }
  0x13   :  { %209 = vmatpush.msra.mxu1 %v53_v31  ;;  %190 = vmatpush.msra.mxu0 %v36_v33  ;;  %v48_v51 = vld [vmem:[%s990_s1 + $0x98] sm:$0xff]  ;;  %v79_v54 = vld [vmem:[%s990_s1 + $0x190] sm:$0xff]  ;;  %v30_v57 = vld [vmem:[%s990_s1 + $0x8] sm:$0xff] }
  0x14   :  { %250 = vmatpush.msra.mxu3 %v84_v34  ;;  %231 = vmatpush.msra.mxu2 %v67_v36  ;;  %v47_v55 = vld [vmem:[%s990_s1 + $0x90] sm:$0xff]  ;;  %v78_v58 = vld [vmem:[%s990_s1 + $0x188] sm:$0xff]  ;;  %v61_v60 = vld [vmem:[%s990_s1 + $0x100] sm:$0xff] }
  0x15   :  { %210 = vmatpush.msra.mxu1 %v52_v35  ;;  %191 = vmatpush.msra.mxu0 %v35_v37  ;;  %v46_v59 = vld [vmem:[%s990_s1 + $0x88] sm:$0xff]  ;;  %v29_v61 = vld [vmem:[%s990_s1] sm:$0xff]  ;;  %v140_v62 = vld [vmem:[%s990_s1 + $0x378] sm:$0xff] }
  0x16   :  { %251 = vmatpush.msra.mxu3 %v83_v38  ;;  %232 = vmatpush.msra.mxu2 %v66_v40  ;;  %v77_v63 = vld [vmem:[%s990_s1 + $0x180] sm:$0xff]  ;;  %v108_v0 = vld [vmem:[%s990_s1 + $0x278] sm:$0xff]  ;;  %v139_v2 = vld [vmem:[%s990_s1 + $0x370] sm:$0xff] }
  0x17   :  { %211 = vmatpush.msra.mxu1 %v51_v39  ;;  %192 = vmatpush.msra.mxu0 %v34_v41  ;;  %v156_v1 = vld [vmem:[%s990_s1 + $0x3f8] sm:$0xff]  ;;  %v45_v3 = vld [vmem:[%s990_s1 + $0x80] sm:$0xff]  ;;  %v107_v4 = vld [vmem:[%s990_s1 + $0x270] sm:$0xff] }
  0x18   :  { %252 = vmatpush.msra.mxu3 %v82_v42  ;;  %233 = vmatpush.msra.mxu2 %v65_v44  ;;  %v124_v5 = vld [vmem:[%s990_s1 + $0x2f8] sm:$0xff]  ;;  %v138_v6 = vld [vmem:[%s990_s1 + $0x368] sm:$0xff]  ;;  %v155_v7 = vld [vmem:[%s990_s1 + $0x3f0] sm:$0xff] }
  0x19   :  { %212 = vmatpush.msra.mxu1 %v50_v43  ;;  %193 = vmatpush.msra.mxu0 %v33_v45  ;;  %v106_v8 = vld [vmem:[%s990_s1 + $0x268] sm:$0xff]  ;;  %v123_v9 = vld [vmem:[%s990_s1 + $0x2f0] sm:$0xff]  ;;  %v137_v10 = vld [vmem:[%s990_s1 + $0x360] sm:$0xff] }
  0x1a   :  { %253 = vmatpush.msra.mxu3 %v81_v46  ;;  %234 = vmatpush.msra.mxu2 %v64_v48  ;;  %v154_v11 = vld [vmem:[%s990_s1 + $0x3e8] sm:$0xff]  ;;  %v105_v12 = vld [vmem:[%s990_s1 + $0x260] sm:$0xff]  ;;  %v136_v15 = vld [vmem:[%s990_s1 + $0x358] sm:$0xff] }
  0x1b   :  { %213 = vmatpush.msra.mxu1 %v49_v47  ;;  %194 = vmatpush.msra.mxu0 %v32_v49  ;;  %v122_v13 = vld [vmem:[%s990_s1 + $0x2e8] sm:$0xff]  ;;  %v27_v14 = vld [vmem:[%s989_s0] sm:$0xff]  ;;  %v104_v17 = vld [vmem:[%s990_s1 + $0x258] sm:$0xff] }
  0x1c   :  { %254 = vmatpush.msra.mxu3 %v80_v50  ;;  %235 = vmatpush.msra.mxu2 %v63_v52  ;;  %v153_v16 = vld [vmem:[%s990_s1 + $0x3e0] sm:$0xff]  ;;  %163 = vst [vmem:[#allocation1] ss:$4 sm:$0xff] %v27_v14  ;;  %v135_v19 = vld [vmem:[%s990_s1 + $0x350] sm:$0xff]  ;;  %v152_v20 = vld [vmem:[%s990_s1 + $0x3d8] sm:$0xff] }
  0x1d   :  { %214 = vmatpush.msra.mxu1 %v48_v51  ;;  %195 = vmatpush.msra.mxu0 %v31_v53  ;;  %v121_v18 = vld [vmem:[%s990_s1 + $0x2e0] sm:$0xff]  ;;  %v103_v21 = vld [vmem:[%s990_s1 + $0x250] sm:$0xff]  ;;  %v120_v22 = vld [vmem:[%s990_s1 + $0x2d8] sm:$0xff] }
  0x1e   :  { %255 = vmatpush.msra.mxu3 %v79_v54  ;;  %236 = vmatpush.msra.mxu2 %v62_v56  ;;  %v134_v23 = vld [vmem:[%s990_s1 + $0x348] sm:$0xff]  ;;  %v151_v24 = vld [vmem:[%s990_s1 + $0x3d0] sm:$0xff]  ;;  %v133_v28 = vld [vmem:[%s990_s1 + $0x340] sm:$0xff] }
  0x1f   :  { %215 = vmatpush.msra.mxu1 %v47_v55  ;;  %196 = vmatpush.msra.mxu0 %v30_v57  ;;  %v28_v25 = vld [vmem:[%s989_s0 + $0x8] sm:$0xff]  ;;  %v119_v27 = vld [vmem:[%s990_s1 + $0x2d0] sm:$0xff]  ;;  %v101_v30 = vld [vmem:[%s990_s1 + $0x240] sm:$0xff] }
  0x20   :  { %256 = vmatpush.msra.mxu3 %v78_v58  ;;  %237 = vmatpush.msra.mxu2 %v61_v60  ;;  %v102_v26 = vld [vmem:[%s990_s1 + $0x248] sm:$0xff]  ;;  %165 = vst [vmem:[#allocation1 + $0x20] ss:$4 sm:$0xff] %v28_v25  ;;  %v132_v32 = vld [vmem:[%s990_s1 + $0x338] sm:$0xff]  ;;  %v149_v33 = vld [vmem:[%s990_s1 + $0x3c0] sm:$0xff] }
  0x21   :  { %216 = vmatpush.msra.mxu1 %v46_v59  ;;  %197 = vmatpush.msra.mxu0 %v29_v61  ;;  %v150_v29 = vld [vmem:[%s990_s1 + $0x3c8] sm:$0xff]  ;;  %v100_v34 = vld [vmem:[%s990_s1 + $0x238] sm:$0xff]  ;;  %v117_v35 = vld [vmem:[%s990_s1 + $0x2c0] sm:$0xff] }
  0x22   :  { %302 = vmatpush.msrb.mxu2 %v140_v62  ;;  %257 = vmatpush.msra.mxu3 %v77_v63  ;;  %v118_v31 = vld [vmem:[%s990_s1 + $0x2c8] sm:$0xff] }
  0x23   :  { %262 = vmatpush.msrb.mxu0 %v108_v0  ;;  %217 = vmatpush.msra.mxu1 %v45_v3 }
  0x24   :  { %322 = vmatpush.msrb.mxu3 %v156_v1  ;;  %303 = vmatpush.msrb.mxu2 %v139_v2 }
  0x25   :  { %263 = vmatpush.msrb.mxu0 %v107_v4  ;;  %282 = vmatpush.msrb.mxu1 %v124_v5 }
  0x26   :  { %304 = vmatpush.msrb.mxu2 %v138_v6  ;;  %323 = vmatpush.msrb.mxu3 %v155_v7 }
  0x27   :  { %264 = vmatpush.msrb.mxu0 %v106_v8  ;;  %283 = vmatpush.msrb.mxu1 %v123_v9 }
  0x28   :  { %305 = vmatpush.msrb.mxu2 %v137_v10  ;;  %324 = vmatpush.msrb.mxu3 %v154_v11 }
  0x29   :  { %265 = vmatpush.msrb.mxu0 %v105_v12  ;;  %284 = vmatpush.msrb.mxu1 %v122_v13 }
  0x2a   :  { %306 = vmatpush.msrb.mxu2 %v136_v15  ;;  %325 = vmatpush.msrb.mxu3 %v153_v16 }
  0x2b   :  { %266 = vmatpush.msrb.mxu0 %v104_v17  ;;  %285 = vmatpush.msrb.mxu1 %v121_v18 }
  0x2c   :  { %307 = vmatpush.msrb.mxu2 %v135_v19  ;;  %326 = vmatpush.msrb.mxu3 %v152_v20 }
  0x2d   :  { %267 = vmatpush.msrb.mxu0 %v103_v21  ;;  %286 = vmatpush.msrb.mxu1 %v120_v22 }
  0x2e   :  { %308 = vmatpush.msrb.mxu2 %v134_v23  ;;  %327 = vmatpush.msrb.mxu3 %v151_v24 }
  0x2f   :  { %268 = vmatpush.msrb.mxu0 %v102_v26  ;;  %287 = vmatpush.msrb.mxu1 %v119_v27 }
  0x30   :  { %309 = vmatpush.msrb.mxu2 %v133_v28  ;;  %328 = vmatpush.msrb.mxu3 %v150_v29 }
  0x31   :  { %14 = vsyncpa [#allocation4], 0  ;;  %269 = vmatpush.msrb.mxu0 %v101_v30  ;;  %288 = vmatpush.msrb.mxu1 %v118_v31  ;;  %v131_v36 = vld [vmem:[%s990_s1 + $0x330] sm:$0xff]  ;;  %v148_v37 = vld [vmem:[%s990_s1 + $0x3b8] sm:$0xff]  ;;  %vm357_vm0 = vcmask 261120   ;;  %vm406_vm1 = vcmask 58368  }
  0x32   :  { %310 = vmatpush.msrb.mxu2 %v132_v32  ;;  %329 = vmatpush.msrb.mxu3 %v149_v33  ;;  %v99_v38 = vld [vmem:[%s990_s1 + $0x230] sm:$0xff]  ;;  %v116_v39 = vld [vmem:[%s990_s1 + $0x2b8] sm:$0xff]  ;;  %v130_v40 = vld [vmem:[%s990_s1 + $0x328] sm:$0xff]  ;;  %vm424_vm5 = vcmask 1041408   ;;  %s444_s25 = sshll.u32 %s995_s6, 4  ;;  %s453_s0 = sshll.u32 %s996_s7, 4  ;;  %s445_s25 = int_to_ptr.hbm [resolvable:$true] %s444_s25  ;;  %s454_s0 = int_to_ptr.hbm [resolvable:$true] %s453_s0 }
  0x33   :  { %270 = vmatpush.msrb.mxu0 %v100_v34  ;;  %289 = vmatpush.msrb.mxu1 %v117_v35  ;;  %v147_v41 = vld [vmem:[%s990_s1 + $0x3b0] sm:$0xff]  ;;  %v98_v42 = vld [vmem:[%s990_s1 + $0x228] sm:$0xff]  ;;  %v129_v44 = vld [vmem:[%s990_s1 + $0x320] sm:$0xff]  ;;  %s519_s29 = smov [#allocation5]  }
  0x34   :  { %311 = vmatpush.msrb.mxu2 %v131_v36  ;;  %330 = vmatpush.msrb.mxu3 %v148_v37  ;;  %v115_v43 = vld [vmem:[%s990_s1 + $0x2b0] sm:$0xff]  ;;  %v146_v45 = vld [vmem:[%s990_s1 + $0x3a8] sm:$0xff]  ;;  %v97_v47 = vld [vmem:[%s990_s1 + $0x220] sm:$0xff] }
  0x35   :  { %271 = vmatpush.msrb.mxu0 %v99_v38  ;;  %290 = vmatpush.msrb.mxu1 %v116_v39  ;;  %v168_v46 = vld.sshfl [vmem:[#allocation1 + $0x10] sm:$0xff pattern:$0x73625140]  ;;  %v114_v48 = vld [vmem:[%s990_s1 + $0x2a8] sm:$0xff]  ;;  %v128_v49 = vld [vmem:[%s990_s1 + $0x318] sm:$0xff] }
  0x36   :  { %312 = vmatpush.msrb.mxu2 %v130_v40  ;;  %331 = vmatpush.msrb.mxu3 %v147_v41  ;;  %v145_v50 = vld [vmem:[%s990_s1 + $0x3a0] sm:$0xff]  ;;  %v169_v52 = vld.sshfl [vmem:[#allocation1 + $0x18] sm:$0xff pattern:$0x73625140]  ;;  %v127_v55 = vld [vmem:[%s990_s1 + $0x310] sm:$0xff] }
  0x37   :  { %272 = vmatpush.msrb.mxu0 %v98_v42  ;;  %291 = vmatpush.msrb.mxu1 %v115_v43  ;;  %v166_v51 = vld.sshfl [vmem:[#allocation1] sm:$0xff pattern:$0x73625140]  ;;  %v96_v53 = vld [vmem:[%s990_s1 + $0x218] sm:$0xff]  ;;  %v95_v58 = vld [vmem:[%s990_s1 + $0x210] sm:$0xff]  ;;  %v408_v43 = vlaneseq }
  0x38   :  { %313 = vmatpush.msrb.mxu2 %v129_v44  ;;  %332 = vmatpush.msrb.mxu3 %v146_v45  ;;  %v113_v54 = vld [vmem:[%s990_s1 + $0x2a0] sm:$0xff]  ;;  %v144_v56 = vld [vmem:[%s990_s1 + $0x398] sm:$0xff]  ;;  %v167_v57 = vld.sshfl [vmem:[#allocation1 + $0x8] sm:$0xff pattern:$0x73625140] }
  0x39   :  { %238 = vmatmul.f32.vlgmr.msra.gmra.mxu2 %v168_v46  ;;  %273 = vmatpush.msrb.mxu0 %v97_v47  ;;  %v112_v59 = vld [vmem:[%s990_s1 + $0x298] sm:$0xff]  ;;  %v126_v60 = vld [vmem:[%s990_s1 + $0x308] sm:$0xff]  ;;  %v143_v61 = vld [vmem:[%s990_s1 + $0x390] sm:$0xff]  ;;  %v409_v46 = vshrl.u32 %v408_v43, 7  ;;  %v414_v47 = vand.u32 127, %v408_v43 }
  0x3a   :  { %292 = vmatpush.msrb.mxu1 %v114_v48  ;;  %314 = vmatpush.msrb.mxu2 %v128_v49  ;;  %v94_v62 = vld [vmem:[%s990_s1 + $0x208] sm:$0xff]  ;;  %v111_v63 = vld [vmem:[%s990_s1 + $0x290] sm:$0xff]  ;;  %v125_v0 = vld [vmem:[%s990_s1 + $0x300] sm:$0xff] }
  0x3b   :  { %333 = vmatpush.msrb.mxu3 %v145_v50  ;;  %198 = vmatmul.f32.vlgmr.msra.gmra.mxu0 %v166_v51  ;;  %v142_v1 = vld [vmem:[%s990_s1 + $0x388] sm:$0xff]  ;;  %v172_v2 = vld.sshfl [vmem:[#allocation1 + $0x30] sm:$0xff pattern:$0x73625140]  ;;  %v93_v3 = vld [vmem:[%s990_s1 + $0x200] sm:$0xff]  ;;  %vm415_vm2 = vcmp.lt.s32.totalorder %v409_v46, 2 }
  0x3c   :  { %258 = vmatmul.f32.vlgmr.msra.gmra.mxu3 %v169_v52  ;;  %274 = vmatpush.msrb.mxu0 %v96_v53  ;;  %v110_v4 = vld [vmem:[%s990_s1 + $0x288] sm:$0xff]  ;;  %v141_v5 = vld [vmem:[%s990_s1 + $0x380] sm:$0xff]  ;;  %v173_v7 = vld.sshfl [vmem:[#allocation1 + $0x38] sm:$0xff pattern:$0x73625140]  ;;  %vm416_vm3 = vcmp.lt.s32.totalorder %v414_v47, 8 }
  0x3d   :  { %293 = vmatpush.msrb.mxu1 %v113_v54  ;;  %315 = vmatpush.msrb.mxu2 %v127_v55  ;;  %v170_v6 = vld.sshfl [vmem:[#allocation1 + $0x20] sm:$0xff pattern:$0x73625140]  ;;  %v171_v9 = vld.sshfl [vmem:[#allocation1 + $0x28] sm:$0xff pattern:$0x73625140]  ;;  %vm417_vm4 = vmand %vm415_vm2, %vm416_vm3 }
  0x3e   :  { %334 = vmatpush.msrb.mxu3 %v144_v56  ;;  %218 = vmatmul.f32.vlgmr.msra.gmra.mxu1 %v167_v57  ;;  %v109_v8 = vld [vmem:[%s990_s1 + $0x280] sm:$0xff]  ;;  %v350_v10 = vld [vmem:[%s992_s3 + $0x38] sm:$0xff]  ;;  %v349_v11 = vld [vmem:[%s992_s3 + $0x30] sm:$0xff] }
  0x3f   :  { %275 = vmatpush.msrb.mxu0 %v95_v58  ;;  %294 = vmatpush.msrb.mxu1 %v112_v59  ;;  %v348_v12 = vld [vmem:[%s992_s3 + $0x28] sm:$0xff]  ;;  %v347_v13 = vld [vmem:[%s992_s3 + $0x20] sm:$0xff]  ;;  %v346_v14 = vld [vmem:[%s992_s3 + $0x18] sm:$0xff] }
  0x40   :  { %316 = vmatpush.msrb.mxu2 %v126_v60  ;;  %335 = vmatpush.msrb.mxu3 %v143_v61  ;;  %v345_v15 = vld [vmem:[%s992_s3 + $0x10] sm:$0xff]  ;;  %v344_v16 = vld [vmem:[%s992_s3 + $0x8] sm:$0xff]  ;;  %v343_v17 = vld [vmem:[%s992_s3] sm:$0xff] }
  0x41   :  { %276 = vmatpush.msrb.mxu0 %v94_v62  ;;  %295 = vmatpush.msrb.mxu1 %v111_v63  ;;  %v475_v18 = vld [vmem:[%s991_s2] ss:$0 sm:$0xff] }
  0x42   :  { %317 = vmatpush.msrb.mxu2 %v125_v0  ;;  %336 = vmatpush.msrb.mxu3 %v142_v1  ;;  %v351_v36 = vld [vmem:[%s993_s4] sm:$0x3]  ;;  %s518_s4 = smov [#allocation2]  }
  0x43   :  { %318 = vmatmul.f32.vlgmr.msrb.gmra.mxu2 %v172_v2  ;;  %277 = vmatpush.msrb.mxu0 %v93_v3  ;;  %v354_v37 = vperm.slane %v351_v36, 1  ;;  %v353_v41 = vperm.slane %v351_v36, 0  ;;  %v403_v45 = vld [vmem:[%s994_s5] sm:$0x3]  ;;  %s442_s5 = sshll.u32 %s518_s4, 4  ;;  %s443_s5 = int_to_ptr.vmem [resolvable:$true] %s442_s5 }
  0x44   :  { %296 = vmatpush.msrb.mxu1 %v110_v4  ;;  %337 = vmatpush.msrb.mxu3 %v141_v5 }
  0x45   :  { %278 = vmatmul.f32.vlgmr.msrb.gmra.mxu0 %v170_v6  ;;  %338 = vmatmul.f32.vlgmr.msrb.gmra.mxu3 %v173_v7 }
  0x46   :  { %297 = vmatpush.msrb.mxu1 %v109_v8  ;;  %373 = vmatpush.msra.mxu0 %v349_v11 }
  0x47   :  { %298 = vmatmul.f32.vlgmr.msrb.gmra.mxu1 %v171_v9 }
  0x48   :  { %393 = vmatpush.msra.mxu1 %v350_v10  ;;  %374 = vmatpush.msra.mxu0 %v347_v13 }
  0x4a   :  { %394 = vmatpush.msra.mxu1 %v348_v12  ;;  %375 = vmatpush.msra.mxu0 %v345_v15 }
  0x4c   :  { %395 = vmatpush.msra.mxu1 %v346_v14  ;;  %376 = vmatpush.msra.mxu0 %v343_v17 }
  0x4e   :  { %396 = vmatpush.msra.mxu1 %v344_v16 }
  0xb8   :  { %v199_v19 = vpop.f32.mrf.mxu0 }
  0xb9   :  { %v200_v20 = vadd.f32 %v475_v18, %v199_v19 }
  0xbb   :  { %v219_v21 = vpop.f32.mrf.mxu1 }
  0xbc   :  { %v220_v22 = vadd.f32 %v219_v21, %v200_v20  ;;  %v239_v23 = vpop.f32.mrf.mxu2 }
  0xbe   :  { %v240_v24 = vadd.f32 %v239_v23, %v220_v22 }
  0xbf   :  { %v259_v25 = vpop.f32.mrf.mxu3 }
  0xc0   :  { %v260_v26 = vadd.f32 %v259_v25, %v240_v24 }
  0xc2   :  { %v279_v27 = vpop.f32.mrf.mxu0 }
  0xc3   :  { %v280_v28 = vadd.f32 %v279_v27, %v260_v26 }
  0xc4   :  { %v299_v29 = vpop.f32.mrf.mxu1 }
  0xc5   :  { %v300_v30 = vadd.f32 %v299_v29, %v280_v28 }
  0xc6   :  { %v319_v31 = vpop.f32.mrf.mxu2 }
  0xc7   :  { %v320_v32 = vadd.f32 %v319_v31, %v300_v30 }
  0xc8   :  { %v339_v33 = vpop.f32.mrf.mxu3 }
  0xc9   :  { %v340_v34 = vadd.f32 %v339_v33, %v320_v32 }
  0xcb   :  { %v342_v35 = vmax.f32 %v340_v34, 0.0 }
  0xcd   :  { %468 = vmatmul.msk.f32.vlgmr.msra.gmra.mxu0 %vm357_vm0, %v342_v35  ;;  %469 = vmatmul.msk.f32.vlgmr.msra.gmra.mxu1 %vm357_vm0, %v342_v35 }
 0x14a   :  { %v398_v38 = vpop.f32.mrf.mxu1  ;;  %v378_v42 = vpop.f32.mrf.mxu0 }
 0x14b   :  { %v399_v39 = vadd.f32 %v398_v38, %v354_v37  ;;  %v379_v44 = vadd.f32 %v378_v42, %v353_v41 }
 0x14d   :  { %v401_v40 = vmul.f32 1.442695, %v399_v39  ;;  %v419_v49 = vmul.f32 %v379_v44, %v379_v44 }
 0x14f   :  { %476 = vpow2.f32 %v401_v40 }
 0x155   :  { %v477_v48 = vpop.eup %476 }
 0x156   :  { %v418_v50 = vmul.f32 %v477_v48, %v477_v48  ;;  %v404_v51 = vmul.f32 %v477_v48, %v403_v45 }
 0x158   :  { %v420_v52 = vadd.f32 %v419_v49, %v418_v50  ;;  %v405_v53 = vadd.f32 %v404_v51, %v379_v44 }
 0x15a   :  { %v421_v54 = vsub.f32 %v420_v52, %v399_v39  ;;  %407 = vst.msk [vmem:[#allocation2] sm:$0x3] %vm406_vm1, %v405_v53 }
 0x15b   :  { %447 = dma.vmem_to_hbm [thread:$0]  %s443_s5, 32, %s445_s25, [#allocation3]  }
 0x15c   :  { %v470_v55 = vadd.f32 -0.5, %v421_v54 }
 0x15e   :  { %v423_v56 = vsel %vm417_vm4, %v470_v55, 0.0 }
 0x15f   :  { %v425_v57 = vsel %vm424_vm5, %v423_v56, 0.0 }
 0x160   :  { %426 = vadd.xlane.f32.xlu0 %v425_v57 }
 0x1d3   :  { %v427_v58 = vpop.xlane.xlu0 %426 }
 0x1d4   :  { %v428_v59 = vrot.slane %v427_v58, 4 }
 0x1d6   :  { %v429_v60 = vadd.f32 %v428_v59, %v427_v58 }
 0x1d8   :  { %v430_v61 = vrot.slane %v429_v60, 2 }
 0x1da   :  { %v431_v62 = vadd.f32 %v430_v61, %v429_v60 }
 0x1dc   :  { %v432_v63 = vrot.slane %v431_v62, 1 }
 0x1de   :  { %v433_v0 = vadd.f32 %v432_v63, %v431_v62 }
 0x1e0   :  { %471 = vpush %v433_v0 }
 0x211   :  { %s472_s28 = spop %471 }
 0x212   :  { %436 = sst [smem:[#allocation5]] %s472_s28 }
 0x213   :  { %456 = dma.smem_to_hbm %s519_s29, 16, %s454_s0, [#allocation4]  }
 0x214   :  { %514 = dma.done.wait [#allocation3], 32  }
 0x215   :  { %515 = vsyncadd [#allocation3], 4294967264 }
 0x216   :  { %516 = dma.done.wait [#allocation4], 16  }
 0x217   :  { %517 = vsyncadd [#allocation4], 4294967280 }
 0x218   :  { %465 = sfence }
 0x219   :  { %466 = vsyncpa [#allocation3], 1 }
 0x21a   :  { %467 = vsyncpa [#allocation4], 1 }

</bundles_post_ra>
